<compile_context>
chip_gen: v7x
topology: tpu7x:2x2x1
jax: 0.10.0
libtpu: 0.0.40
codegen_flags: <defaults>
</compile_context>

<pallas_src>
import math
from functools import partial

import jax
import jax.numpy as jnp
from jax.experimental import pallas as pl
from jax.experimental.pallas import tpu as pltpu

# ----------------------------------------------------------------------------
# Pallas matmul kernel (conv core): out = maybe_relu((A @ B) * scale + shift)
# ----------------------------------------------------------------------------

_TK_CAP = 2304                       # max K tile (multiple of 128)
_A_BLOCK_BYTES = 512 * 2304 * 2      # ~2.25 MiB bf16 A-tile budget
_VMEM_LIMIT = 32 * 1024 * 1024       # fits v5e/v6e/v7x scoped-VMEM budgets


def _round_up(x, m):
    return (x + m - 1) // m * m


def _choose_tk(kp):
    """Largest multiple of 128 dividing kp that is <= _TK_CAP."""
    if kp <= _TK_CAP:
        return kp
    q = kp // 128
    for d in range(_TK_CAP // 128, 0, -1):
        if q % d == 0:
            return d * 128
    return 128


def _choose_tm(m, tk):
    """Largest TM (<=1024) keeping the bf16 A block small and >=2 row tiles."""
    tm = 1024
    while tm > 128:
        if tm * tk * 2 <= _A_BLOCK_BYTES and 2 * tm <= m:
            return tm
        tm //= 2
    return 128


def _choose_tn(n):
    return 256 if n >= 256 else 128


def _mm_kernel_single_k(relu):
    # Single K step: matmul + BN scale/shift (+ReLU) epilogue written straight
    # to the output block (no accumulator scratch, no extra copy).
    def kernel(a_ref, b_ref, s_ref, t_ref, o_ref):
        acc = jnp.dot(a_ref[...], b_ref[...], preferred_element_type=jnp.float32)
        y = acc * s_ref[...] + t_ref[...]
        if relu:
            y = jnp.maximum(y, 0.0)
        o_ref[...] = y.astype(o_ref.dtype)
    return kernel


def _mm_kernel_multi_k(relu):
    # K split over the last ("arbitrary") grid axis: fp32 accumulator scratch.
    def kernel(a_ref, b_ref, s_ref, t_ref, o_ref, acc_ref):
        @pl.when(pl.program_id(2) == 0)
        def _init():
            acc_ref[...] = jnp.zeros_like(acc_ref)

        acc_ref[...] += jnp.dot(a_ref[...], b_ref[...],
                                preferred_element_type=jnp.float32)

        @pl.when(pl.program_id(2) == pl.num_programs(2) - 1)
        def _fin():
            y = acc_ref[...] * s_ref[...] + t_ref[...]
            if relu:
                y = jnp.maximum(y, 0.0)
            o_ref[...] = y.astype(o_ref.dtype)
    return kernel


def fused_matmul(a, b, scale, shift, relu):
    """maybe_relu((a @ b) * scale + shift); scale/shift broadcast per column.

    a: [M, K] bf16 (im2col), b: [K, N] bf16, scale/shift: [N] f32.
    Returns [M, N] bf16 (fp32 MXU accumulation).
    """
    M, K = a.shape
    K2, N = b.shape
    assert K == K2, (K, K2)
    Kp = _round_up(K, 128)
    TK = _choose_tk(Kp)
    TM = _choose_tm(M, TK)
    TN = _choose_tn(N)
    Mp, Np = _round_up(M, TM), _round_up(N, TN)

    if (Mp, Kp) != (M, K):
        a = jnp.pad(a, ((0, Mp - M), (0, Kp - K)))
    if (Kp, Np) != (K, N):
        b = jnp.pad(b, ((0, Kp - K), (0, Np - N)))
    s2 = jnp.pad(scale.astype(jnp.float32).reshape(1, N), ((0, 0), (0, Np - N)))
    t2 = jnp.pad(shift.astype(jnp.float32).reshape(1, N), ((0, 0), (0, Np - N)))

    nk = Kp // TK
    if nk == 1:
        out = pl.pallas_call(
            _mm_kernel_single_k(relu),
            out_shape=jax.ShapeDtypeStruct((Mp, Np), jnp.bfloat16),
            grid=(Mp // TM, Np // TN),
            in_specs=[
                pl.BlockSpec((TM, TK), lambda i, j: (i, 0)),
                pl.BlockSpec((TK, TN), lambda i, j: (0, j)),
                pl.BlockSpec((1, TN), lambda i, j: (0, j)),
                pl.BlockSpec((1, TN), lambda i, j: (0, j)),
            ],
            out_specs=pl.BlockSpec((TM, TN), lambda i, j: (i, j)),
            compiler_params=pltpu.CompilerParams(
                dimension_semantics=("parallel", "parallel"),
                vmem_limit_bytes=_VMEM_LIMIT),
        )(a, b, s2, t2)
    else:
        out = pl.pallas_call(
            _mm_kernel_multi_k(relu),
            out_shape=jax.ShapeDtypeStruct((Mp, Np), jnp.bfloat16),
            grid=(Mp // TM, Np // TN, nk),
            in_specs=[
                pl.BlockSpec((TM, TK), lambda i, j, k: (i, k)),
                pl.BlockSpec((TK, TN), lambda i, j, k: (k, j)),
                pl.BlockSpec((1, TN), lambda i, j, k: (0, j)),
                pl.BlockSpec((1, TN), lambda i, j, k: (0, j)),
            ],
            out_specs=pl.BlockSpec((TM, TN), lambda i, j, k: (i, j)),
            scratch_shapes=[pltpu.VMEM((TM, TN), jnp.float32)],
            compiler_params=pltpu.CompilerParams(
                dimension_semantics=("parallel", "parallel", "arbitrary"),
                vmem_limit_bytes=_VMEM_LIMIT),
        )(a, b, s2, t2)

    if (Mp, Np) != (M, N):
        out = out[:M, :N]
    return out


# ----------------------------------------------------------------------------
# Elementwise add (+ReLU) and LogSoftmax Pallas kernels
# ----------------------------------------------------------------------------

_ADD_LANES = 512
_ADD_MAX_ROWS = 1024


def _make_add_kernel(relu):
    def kernel(a_ref, b_ref, o_ref):
        y = a_ref[...] + b_ref[...]
        if relu:
            y = jnp.maximum(y, 0.0)
        o_ref[...] = y
    return kernel


def add_pallas(a, b, relu=False):
    """Elementwise a+b (optional ReLU) over lane-dense (rows, 512) blocks."""
    shape, dtype = a.shape, a.dtype
    fa = a.reshape(-1)
    fb = b.astype(dtype).reshape(-1)
    L = fa.shape[0]
    rows_needed = -(-L // _ADD_LANES)
    block_rows = max(8, min(_ADD_MAX_ROWS, _round_up(rows_needed, 8)))
    Lp = _round_up(L, block_rows * _ADD_LANES)
    if Lp != L:
        fa = jnp.pad(fa, (0, Lp - L))
        fb = jnp.pad(fb, (0, Lp - L))
    R = Lp // _ADD_LANES
    out = pl.pallas_call(
        _make_add_kernel(relu),
        out_shape=jax.ShapeDtypeStruct((R, _ADD_LANES), dtype),
        grid=(R // block_rows,),
        in_specs=[pl.BlockSpec((block_rows, _ADD_LANES), lambda i: (i, 0)),
                  pl.BlockSpec((block_rows, _ADD_LANES), lambda i: (i, 0))],
        out_specs=pl.BlockSpec((block_rows, _ADD_LANES), lambda i: (i, 0)),
        compiler_params=pltpu.CompilerParams(
            dimension_semantics=("parallel",)),
    )(fa.reshape(R, _ADD_LANES), fb.reshape(R, _ADD_LANES))
    out = out.reshape(-1)
    if Lp != L:
        out = out[:L]
    return out.reshape(shape)


def _logsoftmax_kernel(x_ref, o_ref):
    x = x_ref[...].astype(jnp.float32)
    m = jnp.max(x, axis=-1, keepdims=True)
    e = jnp.exp(x - m)
    s = jnp.sum(e, axis=-1, keepdims=True)
    o_ref[...] = (x - m - jnp.log(s)).astype(o_ref.dtype)


def log_softmax_channels(x):
    """LogSoftmax over the channel (last, NHWC) dimension; returns f32."""
    n, h, w, c = x.shape
    M = n * h * w
    x2 = x.reshape(M, c)
    Cp = _round_up(c, 128)
    rows = 256
    Mp = _round_up(M, rows)
    xp = jnp.pad(x2, ((0, Mp - M), (0, Cp - c)), constant_values=-1e30)
    out = pl.pallas_call(
        _logsoftmax_kernel,
        out_shape=jax.ShapeDtypeStruct((Mp, Cp), jnp.float32),
        grid=(Mp // rows,),
        in_specs=[pl.BlockSpec((rows, Cp), lambda i: (i, 0))],
        out_specs=pl.BlockSpec((rows, Cp), lambda i: (i, 0)),
        compiler_params=pltpu.CompilerParams(
            dimension_semantics=("parallel",)),
    )(xp)
    return out[:M, :c].reshape(n, h, w, c)


# ----------------------------------------------------------------------------
# Conv / ConvTranspose / pooling glue (data movement only; FLOPs live in Pallas)
# ----------------------------------------------------------------------------
# TODO(synk): fold the kh*kw taps into the matmul grid (direct convolution) so
# the 9x im2col matrix never has to be materialized in HBM.

def _im2col(x, kh, kw, stride, padding, dilation):
    n, h, w, c = x.shape
    if padding:
        x = jnp.pad(x, ((0, 0), (padding, padding), (padding, padding), (0, 0)))
    hp, wp = h + 2 * padding, w + 2 * padding
    ho = (hp - dilation * (kh - 1) - 1) // stride + 1
    wo = (wp - dilation * (kw - 1) - 1) // stride + 1
    parts = []
    for i in range(kh):
        for j in range(kw):
            parts.append(x[:, i * dilation: i * dilation + (ho - 1) * stride + 1: stride,
                            j * dilation: j * dilation + (wo - 1) * stride + 1: stride, :])
    cols = parts[0] if len(parts) == 1 else jnp.concatenate(parts, axis=-1)
    return cols.reshape(n * ho * wo, kh * kw * c), ho, wo


def conv_apply(x, cp, *, stride=1, padding=0, dilation=1, relu=False):
    """x: NHWC bf16; cp: prepared conv params {bmat [K,O] bf16, scale, shift}."""
    n, _, _, c = x.shape
    K, n_out = cp["bmat"].shape
    k = int(round(math.sqrt(K // c)))
    assert k * k * c == K, (K, c)
    cols, ho, wo = _im2col(x, k, k, stride, padding, dilation)
    out = fused_matmul(cols, cp["bmat"], cp["scale"], cp["shift"], relu)
    return out.reshape(n, ho, wo, n_out)


def conv_transpose_apply(x, cp, *, stride, padding, output_padding, relu=False):
    """Generic ConvTranspose2d via zero-stuffing + the equivalent convolution."""
    # TODO(synk): decompose stride-2 3x3 deconvs into 4 sub-pixel convs to avoid
    # the 4x zero-stuffed im2col work (done below for the 2x2/s2 case).
    n, h, w, c = x.shape
    K, _ = cp["bmat"].shape
    k = int(round(math.sqrt(K // c)))
    assert k * k * c == K, (K, c)
    if stride > 1:
        hd, wd = (h - 1) * stride + 1, (w - 1) * stride + 1
        xd = jnp.zeros((n, hd, wd, c), x.dtype).at[:, ::stride, ::stride, :].set(x)
    else:
        xd = x
    p = k - 1 - padding
    xd = jnp.pad(xd, ((0, 0), (p, p + output_padding), (p, p + output_padding), (0, 0)))
    return conv_apply(xd, cp, stride=1, padding=0, dilation=1, relu=relu)


def deconv2x2_s2_apply(x, cp, relu=False):
    """ConvTranspose2d(k=2, s=2, p=0) as an exact sub-pixel 1x1 matmul."""
    n, h, w, c = x.shape
    K, n4 = cp["bmat"].shape
    assert K == c and n4 % 4 == 0, (K, c, n4)
    n_out = n4 // 4
    out = fused_matmul(x.reshape(n * h * w, c), cp["bmat"], cp["scale"], cp["shift"], relu)
    out = out.reshape(n, h, w, 2, 2, n_out)
    return out.transpose(0, 1, 3, 2, 4, 5).reshape(n, 2 * h, 2 * w, n_out)


def maxpool_3x3_s2_p1(x):
    n, h, w, c = x.shape
    xp = jnp.pad(x, ((0, 0), (1, 1), (1, 1), (0, 0)), constant_values=-jnp.inf)
    ho = (h + 2 - 3) // 2 + 1
    wo = (w + 2 - 3) // 2 + 1
    out = None
    for i in range(3):
        for j in range(3):
            s = xp[:, i: i + (ho - 1) * 2 + 1: 2, j: j + (wo - 1) * 2 + 1: 2, :]
            out = s if out is None else jnp.maximum(out, s)
    return out


def avg_pool(x, k):
    if k == 1:
        return x
    n, h, w, c = x.shape
    ho, wo = h // k, w // k
    xr = x[:, :ho * k, :wo * k, :].reshape(n, ho, k, wo, k, c).astype(jnp.float32)
    return xr.mean(axis=(2, 4)).astype(x.dtype)


# ----------------------------------------------------------------------------
# Deterministic parameter construction (pretrained ResNet-18 replaced by init),
# with weights pre-transposed to [K, O] bf16 and BN/bias folded at build time.
# ----------------------------------------------------------------------------

class ParamGen:
    def __init__(self, seed):
        self._key = jax.random.PRNGKey(seed)

    def _next(self):
        self._key, sub = jax.random.split(self._key)
        return sub

    def conv(self, out_c, in_c, kh, kw):
        fan_in = in_c * kh * kw
        return jax.random.normal(self._next(), (out_c, in_c, kh, kw),
                                 jnp.float32) * math.sqrt(2.0 / fan_in)

    def convT(self, in_c, out_c, kh, kw):
        fan_in = in_c * kh * kw
        return jax.random.normal(self._next(), (in_c, out_c, kh, kw),
                                 jnp.float32) * math.sqrt(2.0 / fan_in)

    def bias(self, c):
        return 0.01 * jax.random.normal(self._next(), (c,), jnp.float32)

    def bn(self, c):
        return {
            "gamma": 1.0 + 0.05 * jax.random.normal(self._next(), (c,), jnp.float32),
            "beta": 0.05 * jax.random.normal(self._next(), (c,), jnp.float32),
            "mean": jnp.zeros((c,), jnp.float32),
            "var": jnp.ones((c,), jnp.float32),
        }


def _fold_bn(bn, bias, out_c):
    if bn is not None:
        scale = bn["gamma"] / jnp.sqrt(bn["var"] + 1e-5)
        shift = bn["beta"] - bn["mean"] * scale
    else:
        scale = jnp.ones((out_c,), jnp.float32)
        shift = jnp.zeros((out_c,), jnp.float32)
    if bias is not None:
        shift = shift + scale * bias
    return scale, shift


def prep_conv(w, bias, bn):
    """PyTorch Conv2d weight [O, C, kh, kw] -> {bmat [kh*kw*C, O] bf16, scale, shift}."""
    o, c, kh, kw = w.shape
    bmat = jnp.transpose(w, (2, 3, 1, 0)).reshape(kh * kw * c, o).astype(jnp.bfloat16)
    scale, shift = _fold_bn(bn, bias, o)
    return {"bmat": bmat, "scale": scale, "shift": shift}


def prep_conv_transpose(w, bias, bn):
    """PyTorch ConvTranspose2d weight [Cin, Cout, kh, kw] -> equivalent conv params."""
    w_conv = jnp.flip(jnp.transpose(w, (1, 0, 2, 3)), axis=(2, 3))
    return prep_conv(w_conv, bias, bn)


def prep_deconv2x2(w, bias):
    """ConvTranspose2d(k=2, s=2, p=0) -> sub-pixel matmul params [Cin, 4*Cout]."""
    cin, cout, kh, kw = w.shape
    bmat = jnp.transpose(w, (0, 2, 3, 1)).reshape(cin, kh * kw * cout).astype(jnp.bfloat16)
    scale = jnp.ones((kh * kw * cout,), jnp.float32)
    shift = (jnp.tile(bias.astype(jnp.float32), kh * kw) if bias is not None
             else jnp.zeros((kh * kw * cout,), jnp.float32))
    return {"bmat": bmat, "scale": scale, "shift": shift}


# ---- ResNet-18 pieces --------------------------------------------------------

def make_basic_block(pg, in_c, out_c, stride):
    blk = {"conv1": prep_conv(pg.conv(out_c, in_c, 3, 3), None, pg.bn(out_c)),
           "conv2": prep_conv(pg.conv(out_c, out_c, 3, 3), None, pg.bn(out_c))}
    if stride != 1 or in_c != out_c:
        blk["down"] = prep_conv(pg.conv(out_c, in_c, 1, 1), None, pg.bn(out_c))
    return blk


def basic_block_fwd(x, blk, stride):
    out = conv_apply(x, blk["conv1"], stride=stride, padding=1, relu=True)
    out = conv_apply(out, blk["conv2"], stride=1, padding=1, relu=False)
    identity = conv_apply(x, blk["down"], stride=stride) if "down" in blk else x
    return add_pallas(out, identity, relu=True)


def make_layer(pg, in_c, out_c, stride):
    return [make_basic_block(pg, in_c, out_c, stride),
            make_basic_block(pg, out_c, out_c, 1)]


def layer_fwd(x, layer, first_stride):
    x = basic_block_fwd(x, layer[0], first_stride)
    x = basic_block_fwd(x, layer[1], 1)
    return x


# ---- Decoder / MFF / SPP -----------------------------------------------------

def make_decoder(pg, in_c, out_c, k):
    mid = in_c // 4
    return {"conv1": prep_conv(pg.conv(mid, in_c, 1, 1), None, pg.bn(mid)),
            "deconv": prep_conv_transpose(pg.convT(mid, mid, k, k), None, pg.bn(mid)),
            "conv2": prep_conv(pg.conv(out_c, mid, 1, 1), None, pg.bn(out_c))}


def decoder_fwd(x, d, *, stride, padding, output_padding):
    x = conv_apply(x, d["conv1"], relu=True)
    x = conv_transpose_apply(x, d["deconv"], stride=stride, padding=padding,
                             output_padding=output_padding, relu=True)
    x = conv_apply(x, d["conv2"], relu=True)
    return x


def make_mff(pg, n_classes, low_inc, high_inc, outc):
    # TODO(synk): tp_conv2 exists in the torch module but is never used in forward; omitted.
    return {"decoder4_x2": make_decoder(pg, 512, 128, 3),
            "conv2_x2": prep_conv(pg.conv(32, 128, 3, 3), pg.bias(32), pg.bn(32)),
            "high": prep_conv(pg.conv(outc, high_inc, 3, 3), None, pg.bn(outc)),
            "low": prep_conv(pg.conv(outc, low_inc, 1, 1), None, pg.bn(outc))}


def mff_fwd(x_low, x_high, p):
    low_fm = conv_apply(x_low, p["low"], stride=2, padding=0, relu=False)
    high_fm = conv_apply(x_high, p["high"], stride=1, padding=2, dilation=2, relu=False)
    fused = add_pallas(low_fm, high_fm, relu=True)
    c = decoder_fwd(fused, p["decoder4_x2"], stride=2, padding=1, output_padding=1)
    c = conv_apply(c, p["conv2_x2"], stride=1, padding=1, relu=True)
    return fused, log_softmax_channels(c)


def spp_fwd(x, pool_sizes=(16, 8, 4, 2)):
    n, h, w, c = x.shape
    pp = x
    for ps in pool_sizes:
        k = int(h / ps)
        out = avg_pool(x, k)
        out = jax.image.resize(out, (n, h, w, c), method="bilinear",
                               antialias=False).astype(x.dtype)
        pp = add_pallas(pp, out, relu=False)
    return pp


# ---- Full model --------------------------------------------------------------

def make_model(pg, n_classes=21):
    return {
        "conv1": prep_conv(pg.conv(64, 3, 7, 7), None, pg.bn(64)),
        "layer1": make_layer(pg, 64, 64, 1),
        "layer2": make_layer(pg, 64, 128, 2),
        "layer3": make_layer(pg, 128, 256, 2),
        "layer4": make_layer(pg, 256, 512, 2),
        "mff": make_mff(pg, n_classes, 128, 512, 512),
        "decoder1": make_decoder(pg, 64, 64, 3),
        "decoder2": make_decoder(pg, 128, 64, 3),
        "decoder3": make_decoder(pg, 256, 128, 3),
        "decoder4": make_decoder(pg, 512, 256, 3),
        "decoder4_x2": make_decoder(pg, 512, 128, 3),
        "deconv1": prep_conv_transpose(pg.convT(64, 32, 3, 3), pg.bias(32), pg.bn(32)),
        "conv2": prep_conv(pg.conv(32, 32, 3, 3), pg.bias(32), pg.bn(32)),
        "conv2_x2": prep_conv(pg.conv(32, 128, 3, 3), pg.bias(32), pg.bn(32)),
        "deconv2": prep_deconv2x2(pg.convT(32, n_classes, 2, 2), pg.bias(n_classes)),
    }


def in_block_fwd(x, p):
    x = conv_apply(x, p["conv1"], stride=2, padding=3, relu=True)
    return maxpool_3x3_s2_p1(x)


def instruments_mff_forward(params, x_nchw):
    # Input NCHW (PyTorch); internal NHWC bf16; outputs returned NCHW f32.
    x = jnp.transpose(x_nchw, (0, 2, 3, 1)).astype(jnp.bfloat16)
    n, h, w, _ = x.shape

    x1 = in_block_fwd(x, params)
    e1 = layer_fwd(x1, params["layer1"], 1)
    e2 = layer_fwd(e1, params["layer2"], 2)
    e3 = layer_fwd(e2, params["layer3"], 2)
    e4 = layer_fwd(e3, params["layer4"], 2)
    e4 = spp_fwd(e4, (16, 8, 4, 2))

    x2 = jax.image.resize(x, (n, h // 2, w // 2, x.shape[-1]), method="bilinear",
                          antialias=False).astype(jnp.bfloat16)
    x2 = in_block_fwd(x2, params)
    x2_e1 = layer_fwd(x2, params["layer1"], 1)
    x2_e2 = layer_fwd(x2_e1, params["layer2"], 2)

    x_sub24, mff_cls = mff_fwd(x2_e2, e4, params["mff"])

    y2 = add_pallas(x2_e2, decoder_fwd(x_sub24, params["decoder4_x2"],
                                       stride=2, padding=1, output_padding=1))
    y2 = conv_apply(y2, params["conv2_x2"], stride=1, padding=1, relu=True)
    y2 = deconv2x2_s2_apply(y2, params["deconv2"])

    d4 = add_pallas(e3, decoder_fwd(x_sub24, params["decoder4"],
                                    stride=2, padding=1, output_padding=1))
    d3 = add_pallas(e2, decoder_fwd(d4, params["decoder3"],
                                    stride=2, padding=1, output_padding=1))
    d2 = add_pallas(e1, decoder_fwd(d3, params["decoder2"],
                                    stride=2, padding=1, output_padding=1))
    d1 = add_pallas(x1, decoder_fwd(d2, params["decoder1"],
                                    stride=1, padding=1, output_padding=0))

    y = conv_transpose_apply(d1, params["deconv1"], stride=2, padding=1,
                             output_padding=1, relu=True)
    y = conv_apply(y, params["conv2"], stride=1, padding=1, relu=True)
    y = deconv2x2_s2_apply(y, params["deconv2"])

    # eval-mode module returns only y; y2 / mff_cls returned here for inspection.
    return (jnp.transpose(y, (0, 3, 1, 2)).astype(jnp.float32),
            jnp.transpose(y2, (0, 3, 1, 2)).astype(jnp.float32),
            jnp.transpose(mff_cls, (0, 3, 1, 2)))


# ----------------------------------------------------------------------------

if __name__ == "__main__":
    # Numeric sanity check of the fused Pallas matmul (bf16 inputs, f32 accumulate).
    ka, kb = jax.random.split(jax.random.PRNGKey(1))
    A = jax.random.normal(ka, (256, 70), jnp.float32)
    B = jax.random.normal(kb, (70, 50), jnp.float32)
    sc = jnp.linspace(0.5, 1.5, 50, dtype=jnp.float32)
    sh = jnp.linspace(-1.0, 1.0, 50, dtype=jnp.float32)
    A16, B16 = A.astype(jnp.bfloat16), B.astype(jnp.bfloat16)
    ref = jnp.maximum(A16.astype(jnp.float32) @ B16.astype(jnp.float32) * sc + sh, 0.0)
    got = jax.jit(partial(fused_matmul, relu=True))(A16, B16, sc, sh)
    assert jnp.allclose(ref, got.astype(jnp.float32), atol=2e-2, rtol=2e-2), "matmul check failed"

    # NOTE: SPP pool_sizes [16,8,4,2] act on the /32 feature map, so the smallest
    # spatial size this forward admits is 512 (512/32 = 16); batch kept at 1.
    key = jax.random.PRNGKey(0)
    x = jax.random.normal(key, (1, 3, 512, 512), jnp.float32)  # NCHW like PyTorch

    pg = ParamGen(42)
    params = make_model(pg, n_classes=21)

    fwd = jax.jit(instruments_mff_forward)
    y, y2, mff_cls = fwd(params, x)
    jax.block_until_ready((y, y2, mff_cls))

    assert y.shape == (1, 21, 512, 512), y.shape
    assert y2.shape == (1, 21, 64, 64), y2.shape
    assert mff_cls.shape == (1, 32, 32, 32), mff_cls.shape
    assert bool(jnp.all(jnp.isfinite(y)))
    print("KERNEL_OK")
</pallas_src>

<mosaic_0001>
module attributes {stable_mosaic.version = 11 : i64} {
  func.func @kernel(%arg0: i32, %arg1: i32, %arg2: memref<128x128xbf16, #tpu.memory_space<vmem>>, %arg3: memref<128x128xbf16, #tpu.memory_space<vmem>>, %arg4: memref<1x128xf32, #tpu.memory_space<vmem>>, %arg5: memref<1x128xf32, #tpu.memory_space<vmem>>, %arg6: memref<128x128xbf16, #tpu.memory_space<vmem>>) attributes {dimension_semantics = [#tpu.dimension_semantics<parallel>, #tpu.dimension_semantics<parallel>], iteration_bounds = array<i64: 2, 1>, scalar_prefetch = 0 : i64, scratch_operands = 0 : i64, tpu.core_type = #tpu.core_type<tc>, window_params = [{transform_indices = @transform_0, window_bounds = array<i64: 128, 128>}, {transform_indices = @transform_1, window_bounds = array<i64: 128, 128>}, {transform_indices = @transform_2, window_bounds = array<i64: 1, 128>}, {transform_indices = @transform_3, window_bounds = array<i64: 1, 128>}, {transform_indices = @transform_4, window_bounds = array<i64: 128, 128>}]} {
    %c0 = arith.constant 0 : index
    %c0_0 = arith.constant 0 : index
    %0 = vector.load %arg2[%c0, %c0_0] : memref<128x128xbf16, #tpu.memory_space<vmem>>, vector<128x128xbf16>
    %c0_1 = arith.constant 0 : index
    %c0_2 = arith.constant 0 : index
    %1 = vector.load %arg3[%c0_1, %c0_2] : memref<128x128xbf16, #tpu.memory_space<vmem>>, vector<128x128xbf16>
    %cst = arith.constant dense<0.000000e+00> : vector<128x128xf32>
    %2 = tpu.matmul %0, %1, %cst {dimension_numbers = #tpu.dot_dimension_numbers<[1], [0], [0], [1], [0, 0, 1, 1], [], []>} : vector<128x128xbf16>, vector<128x128xbf16>, vector<128x128xf32> -> vector<128x128xf32>
    %c0_3 = arith.constant 0 : index
    %c0_4 = arith.constant 0 : index
    %3 = vector.load %arg4[%c0_3, %c0_4] : memref<1x128xf32, #tpu.memory_space<vmem>>, vector<1x128xf32>
    %4 = vector.broadcast %3 : vector<1x128xf32> to vector<128x128xf32>
    %5 = arith.mulf %2, %4 : vector<128x128xf32>
    %c0_5 = arith.constant 0 : index
    %c0_6 = arith.constant 0 : index
    %6 = vector.load %arg5[%c0_5, %c0_6] : memref<1x128xf32, #tpu.memory_space<vmem>>, vector<1x128xf32>
    %7 = vector.broadcast %6 : vector<1x128xf32> to vector<128x128xf32>
    %8 = arith.addf %5, %7 : vector<128x128xf32>
    %cst_7 = arith.constant 0.000000e+00 : f32
    %9 = vector.broadcast %cst_7 : f32 to vector<128x128xf32>
    %10 = arith.maximumf %8, %9 : vector<128x128xf32>
    %11 = arith.truncf %10 : vector<128x128xf32> to vector<128x128xbf16>
    %c0_8 = arith.constant 0 : index
    %c0_9 = arith.constant 0 : index
    %12 = vector.load %arg6[%c0_8, %c0_9] : memref<128x128xbf16, #tpu.memory_space<vmem>>, vector<128x128xbf16>
    tpu.vector_store %arg6[%c0_8, %c0_9], %11 {strides = array<i32>} : memref<128x128xbf16, #tpu.memory_space<vmem>>, vector<128x128xbf16>,
    return
  }
  func.func @transform_0(%arg0: i32, %arg1: i32) -> (i32, i32) {
    %c0_i32 = arith.constant 0 : i32
    %c0_i32_0 = arith.constant 0 : i32
    return %arg0, %c0_i32 : i32, i32
  }
  func.func @transform_1(%arg0: i32, %arg1: i32) -> (i32, i32) {
    %c0_i32 = arith.constant 0 : i32
    %c0_i32_0 = arith.constant 0 : i32
    return %c0_i32, %arg1 : i32, i32
  }
  func.func @transform_2(%arg0: i32, %arg1: i32) -> (i32, i32) {
    %c0_i32 = arith.constant 0 : i32
    %c0_i32_0 = arith.constant 0 : i32
    return %c0_i32, %arg1 : i32, i32
  }
  func.func @transform_3(%arg0: i32, %arg1: i32) -> (i32, i32) {
    %c0_i32 = arith.constant 0 : i32
    %c0_i32_0 = arith.constant 0 : i32
    return %c0_i32, %arg1 : i32, i32
  }
  func.func @transform_4(%arg0: i32, %arg1: i32) -> (i32, i32) {
    %c0_i32 = arith.constant 0 : i32
    return %arg0, %arg1 : i32, i32
  }
}

</mosaic_0001>

<bundles_post_ra>
// kernel: fused_matmul.1
= control target key start
LH: loop header
LB: loop body
LE: loop exit
PB: predicated region body
PF: predicated region fallthrough
CT: control target
= control target key end

     0   :  { %s1012_s15 = smov 0   ;;  %s1014_s16 = smov 0   ;;  %s1120_s0 = inlined_call_operand.vmem [shape: bf16[256,128], index: 0, kind: input, shape index: {}]   ;;  %s1121_s1 = inlined_call_operand.vmem [shape: bf16[128,128], index: 1, kind: input, shape index: {}]   ;;  %s1122_s2 = inlined_call_operand.vmem [shape: f32[1,128], index: 2, kind: input, shape index: {}]   ;;  %s1123_s3 = inlined_call_operand.vmem [shape: f32[1,128], index: 3, kind: input, shape index: {}]   ;;  %s1124_s4 = inlined_call_operand.vmem [shape: bf16[256,128], index: 4, kind: output, shape index: {}]  }
   0x1   :  { %s1016_s17 = smov 0  }
   0x2 LB: > { %s26_s18 = sadd.s32 1, %s981_s16  ;;  %p755_p0 = scmp.ge.s32.totalorder %s985_s17, 1  ;;  %s985_s17 = sphi %s1016_s17, %s14_s17   ;;  %s981_s16 = sphi %s1014_s16, %s1126_s16   ;;  %s977_s15 = sphi %s1012_s15, %s1125_s15  }
   0x3   : > { %p28_p1 = scmp.ge.s32.totalorder %s26_s18, 2  ;;  %p202_p2 = scmp.lt.s32.totalorder %s985_s17, 3 }
   0x5   : > { %s1128_s18 = smov (%p28_p1, %s26_s18), 0  ;;  %p203_p3 = pnand %p755_p0, %p202_p2 }
   0x6   : > { %v947_v0 = vld [vmem:[%s1121_s1] sm:$0xff] (!%p203_p3)   ;;  %s756_s21 = sshll.u32 (!%p203_p3), %s977_s15, 4  ;;  %v948_v1 = vld [vmem:[%s1121_s1 + $0x8] sm:$0xff] (!%p203_p3)   ;;  %v949_v2 = vld [vmem:[%s1121_s1 + $0x10] sm:$0xff] (!%p203_p3)  }
   0x7   : > { %206 = sbr.rel (%p203_p3) target bundleno = 272 (0x110), region = 36  ;;  %p242_p4 = scmp.lt.s32.totalorder (!%p203_p3), %s756_s21, 31  ;;  %875 = vmatprep.subr.bf16.mxu0 (!%p203_p3), %v947_v0  ;;  %907 = vmatprep.subr.bf16.mxu1 (!%p203_p3), %v947_v0  ;;  %v950_v3 = vld [vmem:[%s1121_s1 + $0x18] sm:$0xff] (!%p203_p3)   ;;  %v951_v6 = vld [vmem:[%s1121_s1 + $0x20] sm:$0xff] (!%p203_p3)   ;;  %v952_v7 = vld [vmem:[%s1121_s1 + $0x28] sm:$0xff] (!%p203_p3)  }
   0x8   : > { %876 = vmatpush3.bf16.msra.mxu0 (!%p203_p3), %v947_v0  ;;  %915 = vmatpush3.bf16.msra.mxu1 (!%p203_p3), %v947_v0  ;;  %v953_v8 = vld [vmem:[%s1121_s1 + $0x30] sm:$0xff] (!%p203_p3)   ;;  %v954_v9 = vld [vmem:[%s1121_s1 + $0x38] sm:$0xff] (!%p203_p3)   ;;  %v776_v16 = vld [vmem:[%s1122_s2] ss:$0 sm:$0xff] (!%p203_p3) }
   0x9   : > { %877 = vmatprep.subr.bf16.mxu0 (!%p203_p3), %v948_v1  ;;  %908 = vmatprep.subr.bf16.mxu1 (!%p203_p3), %v948_v1  ;;  %v1078_v18 = vld [vmem:[%s1123_s3] ss:$0 sm:$0xff] (!%p203_p3) }
   0xc   : > { %878 = vmatpush3.bf16.msra.mxu0 (!%p203_p3), %v948_v1  ;;  %916 = vmatpush3.bf16.msra.mxu1 (!%p203_p3), %v948_v1 }
   0xd   : > { %879 = vmatprep.subr.bf16.mxu0 (!%p203_p3), %v949_v2  ;;  %909 = vmatprep.subr.bf16.mxu1 (!%p203_p3), %v949_v2 }
   0xe   : > { %s1130_s21 = smov (!%p242_p4, %s756_s21), 31 }
   0xf   : > { %s757_s26 = sshll.u32 %s1130_s21, 2 }
  0x10   : > { %s1047_s29 = scalar_lea.vmem %s1120_s0, %s757_s26  ;;  %880 = vmatpush3.bf16.msra.mxu0 %v949_v2  ;;  %917 = vmatpush3.bf16.msra.mxu1 %v949_v2  ;;  %s1093_s24 = scalar_lea.vmem %s1124_s4, %s757_s26 }
  0x11   : > { %v955_v4 = vld [vmem:[%s1047_s29] sm:$0xff]   ;;  %881 = vmatprep.subr.bf16.mxu0 %v950_v3  ;;  %910 = vmatprep.subr.bf16.mxu1 %v950_v3  ;;  %v957_v10 = vld [vmem:[%s1047_s29 + $0x8] sm:$0xff]   ;;  %v959_v12 = vld [vmem:[%s1047_s29 + $0x10] sm:$0xff]  }
  0x12   : > { %v956_v5 = vld [vmem:[%s1047_s29 + $0x20] sm:$0xff]   ;;  %891 = vmatprep.mubr.bf16.mxu0 %v955_v4  ;;  %v958_v11 = vld [vmem:[%s1047_s29 + $0x28] sm:$0xff]   ;;  %v960_v13 = vld [vmem:[%s1047_s29 + $0x30] sm:$0xff]  }
  0x13   : > { %899 = vmatprep.mubr.bf16.mxu1 %v956_v5  ;;  %v961_v14 = vld [vmem:[%s1047_s29 + $0x18] sm:$0xff]  }
  0x14   : > { %882 = vmatpush3.bf16.msra.mxu0 %v950_v3  ;;  %918 = vmatpush3.bf16.msra.mxu1 %v950_v3  ;;  %v962_v15 = vld [vmem:[%s1047_s29 + $0x38] sm:$0xff]  }
  0x15   : > { %883 = vmatprep.subr.bf16.mxu0 %v951_v6  ;;  %911 = vmatprep.subr.bf16.mxu1 %v951_v6 }
  0x18   : > { %884 = vmatpush3.bf16.msra.mxu0 %v951_v6  ;;  %919 = vmatpush3.bf16.msra.mxu1 %v951_v6 }
  0x19   : > { %885 = vmatprep.subr.bf16.mxu0 %v952_v7  ;;  %912 = vmatprep.subr.bf16.mxu1 %v952_v7 }
  0x1c   : > { %886 = vmatpush3.bf16.msra.mxu0 %v952_v7  ;;  %920 = vmatpush3.bf16.msra.mxu1 %v952_v7 }
  0x1d   : > { %887 = vmatprep.subr.bf16.mxu0 %v953_v8  ;;  %913 = vmatprep.subr.bf16.mxu1 %v953_v8 }
  0x20   : > { %888 = vmatpush3.bf16.msra.mxu0 %v953_v8  ;;  %921 = vmatpush3.bf16.msra.mxu1 %v953_v8 }
  0x21   : > { %889 = vmatprep.subr.bf16.mxu0 %v954_v9  ;;  %914 = vmatprep.subr.bf16.mxu1 %v954_v9 }
  0x24   : > { %890 = vmatpush3.bf16.msra.mxu0 %v954_v9  ;;  %922 = vmatpush3.bf16.msra.mxu1 %v954_v9 }
  0x27   : > { %892 = vmatmul.mubr.bf16.vlgmr.msra.gmra.mrb[0].mxu0 %v957_v10  ;;  %900 = vmatmul.mubr.bf16.vlgmr.msra.gmra.mrb[0].mxu1 %v958_v11 }
  0x28   : > { %895 = vmatprep.mubr.bf16.mxu0 %v959_v12  ;;  %903 = vmatprep.mubr.bf16.mxu1 %v960_v13 }
  0x2f   : > { %896 = vmatmul.mubr.bf16.gmra.mrb[4].mxu0 %v961_v14  ;;  %904 = vmatmul.mubr.bf16.gmra.mrb[4].mxu1 %v962_v15 }
  0xfa   : > { %v893_v17 = vpop.f32.mrb[0].mxu0  ;;  %v901_v19 = vpop.f32.mrb[0].mxu1 }
  0xfb   : > { %v501_v20 = vmul.f32 %v893_v17, %v776_v16  ;;  %v509_v21 = vmul.f32 %v901_v19, %v776_v16  ;;  %v429_v22 = vpop.f32.mrb[1].mxu0  ;;  %v461_v23 = vpop.f32.mrb[1].mxu1 }
  0xfc   : > { %v499_v24 = vmul.f32 %v776_v16, %v429_v22  ;;  %v507_v25 = vmul.f32 %v776_v16, %v461_v23  ;;  %v894_v26 = vpop.f32.mrb[2].mxu0  ;;  %v902_v27 = vpop.f32.mrb[2].mxu1 }
  0xfd   : > { %v524_v28 = vadd.f32 %v1078_v18, %v501_v20  ;;  %v532_v29 = vadd.f32 %v1078_v18, %v509_v21  ;;  %v502_v30 = vmul.f32 %v894_v26, %v776_v16  ;;  %v510_v31 = vmul.f32 %v902_v27, %v776_v16  ;;  %v432_v32 = vpop.f32.mrb[3].mxu0  ;;  %v464_v33 = vpop.f32.mrb[3].mxu1 }
  0xfe   : > { %v522_v34 = vadd.f32 %v1078_v18, %v499_v24  ;;  %v530_v35 = vadd.f32 %v1078_v18, %v507_v25  ;;  %v500_v36 = vmul.f32 %v776_v16, %v432_v32  ;;  %v508_v37 = vmul.f32 %v776_v16, %v464_v33 }
  0xff   : > { %v525_v38 = vadd.f32 %v1078_v18, %v502_v30  ;;  %v533_v39 = vadd.f32 %v1078_v18, %v510_v31  ;;  %v540_v42 = vmax.f32 %v524_v28, 0.0  ;;  %v548_v43 = vmax.f32 %v532_v29, 0.0 }
 0x100   : > { %v523_v40 = vadd.f32 %v1078_v18, %v500_v36  ;;  %v531_v41 = vadd.f32 %v1078_v18, %v508_v37  ;;  %v538_v46 = vmax.f32 %v522_v34, 0.0  ;;  %v546_v47 = vmax.f32 %v530_v35, 0.0 }
 0x101   : > { %v541_v44 = vmax.f32 %v525_v38, 0.0  ;;  %v549_v45 = vmax.f32 %v533_v39, 0.0 }
 0x102   : > { %v539_v48 = vmax.f32 %v523_v40, 0.0  ;;  %v547_v49 = vmax.f32 %v531_v41, 0.0  ;;  %v897_v50 = vpop.f32.mrb[4].mxu0  ;;  %v905_v51 = vpop.f32.mrb[4].mxu1 }
 0x103   : > { %v820_v52 = vpack.c.bf16 %v541_v44, %v540_v42  ;;  %v840_v53 = vpack.c.bf16 %v549_v45, %v548_v43  ;;  %v505_v54 = vmul.f32 %v897_v50, %v776_v16  ;;  %v513_v55 = vmul.f32 %v905_v51, %v776_v16  ;;  %v445_v56 = vpop.f32.mrb[5].mxu0  ;;  %v477_v57 = vpop.f32.mrb[5].mxu1 }
 0x104   : > { %v815_v58 = vpack.c.bf16 %v539_v48, %v538_v46  ;;  %v835_v59 = vpack.c.bf16 %v547_v49, %v546_v47  ;;  %v503_v60 = vmul.f32 %v776_v16, %v445_v56  ;;  %v511_v61 = vmul.f32 %v776_v16, %v477_v57  ;;  %v898_v62 = vpop.f32.mrb[6].mxu0  ;;  %v906_v63 = vpop.f32.mrb[6].mxu1 }
 0x105   : > { %852 = vst [vmem:[%s1093_s24 + $0x8] sm:$0xff] %v820_v52   ;;  %856 = vst [vmem:[%s1093_s24 + $0x28] sm:$0xff] %v840_v53   ;;  %v528_v0 = vadd.f32 %v1078_v18, %v505_v54  ;;  %v536_v1 = vadd.f32 %v1078_v18, %v513_v55  ;;  %v506_v2 = vmul.f32 %v898_v62, %v776_v16  ;;  %v448_v4 = vpop.f32.mrb[7].mxu0  ;;  %v480_v5 = vpop.f32.mrb[7].mxu1 }
 0x106   : > { %v514_v3 = vmul.f32 %v906_v63, %v776_v16  ;;  %816 = vst [vmem:[%s1093_s24] sm:$0xff] %v815_v58   ;;  %855 = vst [vmem:[%s1093_s24 + $0x20] sm:$0xff] %v835_v59   ;;  %v526_v6 = vadd.f32 %v1078_v18, %v503_v60  ;;  %v534_v7 = vadd.f32 %v1078_v18, %v511_v61 }
 0x107   : > { %v504_v8 = vmul.f32 %v776_v16, %v448_v4  ;;  %v512_v9 = vmul.f32 %v776_v16, %v480_v5  ;;  %v529_v10 = vadd.f32 %v1078_v18, %v506_v2  ;;  %v544_v14 = vmax.f32 %v528_v0, 0.0 }
 0x108   : > { %v537_v11 = vadd.f32 %v1078_v18, %v514_v3  ;;  %v552_v15 = vmax.f32 %v536_v1, 0.0  ;;  %v542_v20 = vmax.f32 %v526_v6, 0.0  ;;  %v550_v21 = vmax.f32 %v534_v7, 0.0 }
 0x109   : > { %v527_v12 = vadd.f32 %v1078_v18, %v504_v8  ;;  %v535_v13 = vadd.f32 %v1078_v18, %v512_v9  ;;  %v545_v17 = vmax.f32 %v529_v10, 0.0 }
 0x10a   : > { %v553_v19 = vmax.f32 %v537_v11, 0.0 }
 0x10b   : > { %v543_v22 = vmax.f32 %v527_v12, 0.0  ;;  %v551_v16 = vmax.f32 %v535_v13, 0.0  ;;  %v830_v23 = vpack.c.bf16 %v545_v17, %v544_v14 }
 0x10c   : > { %v850_v24 = vpack.c.bf16 %v553_v19, %v552_v15 }
 0x10d   : > { %v825_v25 = vpack.c.bf16 %v543_v22, %v542_v20  ;;  %v845_v26 = vpack.c.bf16 %v551_v16, %v550_v21  ;;  %854 = vst [vmem:[%s1093_s24 + $0x18] sm:$0xff] %v830_v23  }
 0x10e   : > { %858 = vst [vmem:[%s1093_s24 + $0x38] sm:$0xff] %v850_v24  }
 0x10f   : > { %853 = vst [vmem:[%s1093_s24 + $0x10] sm:$0xff] %v825_v25   ;;  %857 = vst [vmem:[%s1093_s24 + $0x30] sm:$0xff] %v845_v26  }
 0x110 PF: > { %s14_s17 = sadd.s32 1, %s985_s17   ;;  %s1125_s15 = smov %s981_s16 }
 0x111   : > { %p11_p5 = scmp.ge.s32.totalorder %s14_s17, 4   ;;  %s1126_s16 = smov %s1128_s18 }
 0x113   :  { %13 = sbr.rel (!%p11_p5) target bundleno = 2 (0x2), region = 75 }

</bundles_post_ra>
